<compile_context>
chip_gen: v7x
topology: tpu7x:2x2x1
jax: 0.10.0
libtpu: 0.0.40
codegen_flags: <defaults>
</compile_context>

<pallas_src>
import functools

import jax
import jax.numpy as jnp
from jax.experimental import pallas as pl
from jax.experimental.pallas import tpu as pltpu


def _round_up(x, m):
    return (x + m - 1) // m * m


def critic_kernel(st_ref, at_ref, w_ref, b_ref, o_ref, *, dims):
    """dims = (S, A, H, Out, off_a, off_w2, off_w3, off_b2, off_b3), static ints.

    Batch-in-lanes: st_ref [S, block_b], at_ref [A, block_b], o_ref [Out, block_b].
    w_ref holds W1_s^T / W1_a^T / W2^T / W3 stacked along sublanes; b_ref holds
    b1 / b2 / b3 as column vectors (broadcast over the lane/batch axis).
    """
    S, A, H, Out, off_a, off_w2, off_w3, off_b2, off_b3 = dims
    st = st_ref[...]          # [S, B_blk]
    at = at_ref[...]          # [A, B_blk]

    # Layer 1: h1^T = W1_s^T @ s^T + W1_a^T @ a^T + b1   (concat folded away)
    h1 = (jnp.dot(w_ref[0:H, 0:S], st, preferred_element_type=jnp.float32)
          + jnp.dot(w_ref[off_a:off_a + H, 0:A], at,
                    preferred_element_type=jnp.float32)
          + b_ref[0:H, :])
    h1 = jnp.maximum(h1, 0.0)

    # Layer 2: h2^T = W2^T @ h1^T + b2
    h2 = (jnp.dot(w_ref[off_w2:off_w2 + H, 0:H], h1,
                  preferred_element_type=jnp.float32)
          + b_ref[off_b2:off_b2 + H, :])
    h2 = jnp.maximum(h2, 0.0)

    # Layer 3.
    if Out == 1:
        # VPU multiply + sublane (XLU) reduction: avoids an MXU push whose
        # useful output is a single row, and any lane-0 slice/relayout.
        w3_col = w_ref[off_w3:off_w3 + H, 0:1]                      # [H, 1]
        out = (jnp.sum(h2 * w3_col, axis=0, keepdims=True)
               + b_ref[off_b3:off_b3 + 1, :])                       # [1, B_blk]
    else:
        out = (jnp.dot(w_ref[off_w3:off_w3 + Out, 0:H], h2,
                       preferred_element_type=jnp.float32)
               + b_ref[off_b3:off_b3 + Out, :])                     # [Out, B_blk]
    o_ref[...] = out.astype(o_ref.dtype)


def pack_critic_params(params, state_dim, action_dim):
    """One-time repack for the batch-in-lanes kernel.

    Weights are stored transposed (output-features on sublanes) and stacked
    into one sublane-aligned slab; biases are stacked as a single column slab.
    W1 is split into its state / action parts so the kernel never needs a
    concatenated input.
    """
    w1, b1, w2, b2, w3, b3 = params
    S, A = state_dim, action_dim
    H = w2.shape[0]
    Out = w3.shape[1]
    assert w1.shape[0] == S + A

    blk = _round_up(H, 8)
    off_a, off_w2, off_w3 = blk, 2 * blk, 3 * blk
    rows = 4 * blk
    cols = max(S, A, H)

    w_slab = jnp.zeros((rows, cols), jnp.float32)
    w_slab = w_slab.at[0:H, 0:S].set(w1[:S].T)                 # W1_s^T  [H,S]
    w_slab = w_slab.at[off_a:off_a + H, 0:A].set(w1[S:].T)     # W1_a^T  [H,A]
    w_slab = w_slab.at[off_w2:off_w2 + H, 0:H].set(w2.T)       # W2^T    [H,H]
    if Out == 1:
        w_slab = w_slab.at[off_w3:off_w3 + H, 0:1].set(w3)     # W3 col  [H,1]
    else:
        assert Out <= blk and Out <= cols
        w_slab = w_slab.at[off_w3:off_w3 + Out, 0:H].set(w3.T)  # W3^T   [Out,H]

    off_b2 = blk
    off_b3 = 2 * blk
    rows_b = 2 * blk + _round_up(Out, 8)
    bias = jnp.zeros((rows_b, 1), jnp.float32)
    bias = bias.at[0:H, 0].set(b1[0])
    bias = bias.at[off_b2:off_b2 + H, 0].set(b2[0])
    bias = bias.at[off_b3:off_b3 + Out, 0].set(b3[0])

    dims = (S, A, H, Out, off_a, off_w2, off_w3, off_b2, off_b3)
    return w_slab, bias, dims


def critic_forward(s_t, a_t, packed, *, block_b=8192):
    """Pallas Critic forward, batch-in-lanes.

    s_t: [S, B], a_t: [A, B] (batch on the last/lane axis, produced that way).
    Returns [B, Out] to match the PyTorch module's output layout.
    """
    w_slab, bias, dims = packed
    S, A, _H, Out = dims[0], dims[1], dims[2], dims[3]
    B = s_t.shape[1]
    assert s_t.shape[0] == S and a_t.shape == (A, B)

    block_b = _round_up(block_b, 128)
    # Pad the batch (never collapse the tile): lane-align, then either fit the
    # whole batch in one/two tiles or pad up to a multiple of block_b.
    B_pad = _round_up(B, 128)
    if B_pad <= block_b:
        if B_pad >= 256 and B_pad % 256 == 0:
            block_b = B_pad // 2        # give v7x's second TensorCore work
        else:
            block_b = B_pad
    else:
        B_pad = _round_up(B, block_b)
    grid = (B_pad // block_b,)

    if B_pad != B:
        pad = ((0, 0), (0, B_pad - B))
        s_t = jnp.pad(s_t, pad)
        a_t = jnp.pad(a_t, pad)

    kernel = functools.partial(critic_kernel, dims=dims)
    out_t = pl.pallas_call(
        kernel,
        out_shape=jax.ShapeDtypeStruct((Out, B_pad), jnp.float32),
        grid=grid,
        in_specs=[
            pl.BlockSpec((S, block_b), lambda i: (0, i)),        # s^T tile (lane-dense)
            pl.BlockSpec((A, block_b), lambda i: (0, i)),        # a^T tile
            pl.BlockSpec(w_slab.shape, lambda i: (0, 0)),        # weight slab, VMEM-resident
            pl.BlockSpec(bias.shape, lambda i: (0, 0)),          # bias slab, VMEM-resident
        ],
        out_specs=pl.BlockSpec((Out, block_b), lambda i: (0, i)),  # lane-dense output
        compiler_params=pltpu.CompilerParams(
            dimension_semantics=("parallel",),                   # batch axis -> both TCs
        ),
    )(s_t, a_t, w_slab, bias)

    # Drop padded batch columns; the transpose is on a tiny [Out, B] array.
    return out_t[:, :B].T


def init_critic_params(key, input_size, hidden_size, output_size):
    """Deterministic init mirroring nn.Linear's U(-1/sqrt(fan_in), 1/sqrt(fan_in)).
    Weights stored as [in_features, out_features] (transpose of torch layout)."""
    keys = jax.random.split(key, 6)

    def linear(kw, kb, fan_in, fan_out):
        bound = 1.0 / jnp.sqrt(jnp.float32(fan_in))
        w = jax.random.uniform(kw, (fan_in, fan_out), jnp.float32, -bound, bound)
        b = jax.random.uniform(kb, (1, fan_out), jnp.float32, -bound, bound)
        return w, b

    w1, b1 = linear(keys[0], keys[1], input_size, hidden_size)
    w2, b2 = linear(keys[2], keys[3], hidden_size, hidden_size)
    w3, b3 = linear(keys[4], keys[5], hidden_size, output_size)
    return (w1, b1, w2, b2, w3, b3)


def critic_reference(s, a, params):
    """Pure-JAX reference (mirrors the PyTorch forward). s:[B,S], a:[B,A]."""
    w1, b1, w2, b2, w3, b3 = params
    x = jnp.concatenate([s, a], axis=1)
    x = jnp.maximum(x @ w1 + b1, 0.0)
    x = jnp.maximum(x @ w2 + b2, 0.0)
    return x @ w3 + b3


if __name__ == "__main__":
    # Small shapes consistent with the Critic: state_dim + action_dim = input_size.
    batch = 8
    state_dim = 12
    action_dim = 4
    input_size = state_dim + action_dim
    hidden_size = 32
    output_size = 1

    key = jax.random.PRNGKey(0)
    k_s, k_a, k_p = jax.random.split(key, 3)
    # Producer emits the batch-in-lanes layout directly (no XLA transpose).
    s_t = jax.random.normal(k_s, (state_dim, batch), jnp.float32)
    a_t = jax.random.normal(k_a, (action_dim, batch), jnp.float32)
    params = init_critic_params(k_p, input_size, hidden_size, output_size)
    packed = pack_critic_params(params, state_dim, action_dim)

    out = critic_forward(s_t, a_t, packed)
    out = jax.block_until_ready(out)

    ref = critic_reference(s_t.T, a_t.T, params)
    assert out.shape == (batch, output_size)
    assert jnp.allclose(out, ref, atol=1e-4, rtol=1e-4), "mismatch vs reference"

    print("KERNEL_OK")
</pallas_src>

<mosaic_0001>
module attributes {stable_mosaic.version = 11 : i64} {
  func.func @critic_kernel(%arg0: i32, %arg1: memref<12x128xf32, #tpu.memory_space<vmem>>, %arg2: memref<4x128xf32, #tpu.memory_space<vmem>>, %arg3: memref<128x32xf32, #tpu.memory_space<vmem>>, %arg4: memref<72x1xf32, #tpu.memory_space<vmem>>, %arg5: memref<1x128xf32, #tpu.memory_space<vmem>>) attributes {dimension_semantics = [#tpu.dimension_semantics<parallel>], iteration_bounds = array<i64: 1>, scalar_prefetch = 0 : i64, scratch_operands = 0 : i64, tpu.core_type = #tpu.core_type<tc>, window_params = [{transform_indices = @transform_0, window_bounds = array<i64: 12, 128>}, {transform_indices = @transform_1, window_bounds = array<i64: 4, 128>}, {pipeline_mode = #tpu.pipeline_mode<synchronous>, transform_indices = @transform_2, window_bounds = array<i64: 128, 32>}, {pipeline_mode = #tpu.pipeline_mode<synchronous>, transform_indices = @transform_3, window_bounds = array<i64: 72, 1>}, {transform_indices = @transform_4, window_bounds = array<i64: 1, 128>}]} {
    %c0 = arith.constant 0 : index
    %c0_0 = arith.constant 0 : index
    %0 = vector.load %arg1[%c0, %c0_0] : memref<12x128xf32, #tpu.memory_space<vmem>>, vector<12x128xf32>
    %c0_1 = arith.constant 0 : index
    %c0_2 = arith.constant 0 : index
    %1 = vector.load %arg2[%c0_1, %c0_2] : memref<4x128xf32, #tpu.memory_space<vmem>>, vector<4x128xf32>
    %c0_3 = arith.constant 0 : index
    %c0_4 = arith.constant 0 : index
    %2 = vector.load %arg3[%c0_3, %c0_4] : memref<128x32xf32, #tpu.memory_space<vmem>>, vector<32x12xf32>
    %cst = arith.constant dense<0.000000e+00> : vector<32x128xf32>
    %3 = tpu.matmul %2, %0, %cst {dimension_numbers = #tpu.dot_dimension_numbers<[1], [0], [0], [1], [0, 0, 1, 1], [], []>} : vector<32x12xf32>, vector<12x128xf32>, vector<32x128xf32> -> vector<32x128xf32>
    %c32 = arith.constant 32 : index
    %c0_5 = arith.constant 0 : index
    %4 = vector.load %arg3[%c32, %c0_5] : memref<128x32xf32, #tpu.memory_space<vmem>>, vector<32x4xf32>
    %cst_6 = arith.constant dense<0.000000e+00> : vector<32x128xf32>
    %5 = tpu.matmul %4, %1, %cst_6 {dimension_numbers = #tpu.dot_dimension_numbers<[1], [0], [0], [1], [0, 0, 1, 1], [], []>} : vector<32x4xf32>, vector<4x128xf32>, vector<32x128xf32> -> vector<32x128xf32>
    %6 = arith.addf %3, %5 : vector<32x128xf32>
    %c0_7 = arith.constant 0 : index
    %c0_8 = arith.constant 0 : index
    %7 = vector.load %arg4[%c0_7, %c0_8] : memref<72x1xf32, #tpu.memory_space<vmem>>, vector<32x1xf32>
    %8 = vector.broadcast %7 : vector<32x1xf32> to vector<32x128xf32>
    %9 = arith.addf %6, %8 : vector<32x128xf32>
    %cst_9 = arith.constant 0.000000e+00 : f32
    %10 = vector.broadcast %cst_9 : f32 to vector<32x128xf32>
    %11 = arith.maximumf %9, %10 : vector<32x128xf32>
    %c64 = arith.constant 64 : index
    %c0_10 = arith.constant 0 : index
    %12 = vector.load %arg3[%c64, %c0_10] : memref<128x32xf32, #tpu.memory_space<vmem>>, vector<32x32xf32>
    %cst_11 = arith.constant dense<0.000000e+00> : vector<32x128xf32>
    %13 = tpu.matmul %12, %11, %cst_11 {dimension_numbers = #tpu.dot_dimension_numbers<[1], [0], [0], [1], [0, 0, 1, 1], [], []>} : vector<32x32xf32>, vector<32x128xf32>, vector<32x128xf32> -> vector<32x128xf32>
    %c32_12 = arith.constant 32 : index
    %c0_13 = arith.constant 0 : index
    %14 = vector.load %arg4[%c32_12, %c0_13] : memref<72x1xf32, #tpu.memory_space<vmem>>, vector<32x1xf32>
    %15 = vector.broadcast %14 : vector<32x1xf32> to vector<32x128xf32>
    %16 = arith.addf %13, %15 : vector<32x128xf32>
    %cst_14 = arith.constant 0.000000e+00 : f32
    %17 = vector.broadcast %cst_14 : f32 to vector<32x128xf32>
    %18 = arith.maximumf %16, %17 : vector<32x128xf32>
    %c96 = arith.constant 96 : index
    %c0_15 = arith.constant 0 : index
    %19 = vector.load %arg3[%c96, %c0_15] : memref<128x32xf32, #tpu.memory_space<vmem>>, vector<32x1xf32>
    %20 = vector.broadcast %19 : vector<32x1xf32> to vector<32x128xf32>
    %21 = arith.mulf %18, %20 : vector<32x128xf32>
    %cst_16 = arith.constant dense<0.000000e+00> : vector<128xf32>
    %22 = vector.multi_reduction <add>, %21, %cst_16 [0] : vector<32x128xf32> to vector<128xf32>
    %23 = vector.shape_cast %22 : vector<128xf32> to vector<1x128xf32>
    %c64_17 = arith.constant 64 : index
    %c0_18 = arith.constant 0 : index
    %24 = vector.load %arg4[%c64_17, %c0_18] : memref<72x1xf32, #tpu.memory_space<vmem>>, vector<1x1xf32>
    %25 = vector.broadcast %24 : vector<1x1xf32> to vector<1x128xf32>
    %26 = arith.addf %23, %25 : vector<1x128xf32>
    %c0_19 = arith.constant 0 : index
    %c0_20 = arith.constant 0 : index
    %27 = vector.load %arg5[%c0_19, %c0_20] : memref<1x128xf32, #tpu.memory_space<vmem>>, vector<1x128xf32>
    tpu.vector_store %arg5[%c0_19, %c0_20], %26 {strides = array<i32>} : memref<1x128xf32, #tpu.memory_space<vmem>>, vector<1x128xf32>,
    return
  }
  func.func @transform_0(%arg0: i32) -> (i32, i32) {
    %c0_i32 = arith.constant 0 : i32
    %c0_i32_0 = arith.constant 0 : i32
    return %c0_i32, %arg0 : i32, i32
  }
  func.func @transform_1(%arg0: i32) -> (i32, i32) {
    %c0_i32 = arith.constant 0 : i32
    %c0_i32_0 = arith.constant 0 : i32
    return %c0_i32, %arg0 : i32, i32
  }
  func.func @transform_2(%arg0: i32) -> (i32, i32) {
    %c0_i32 = arith.constant 0 : i32
    %c0_i32_0 = arith.constant 0 : i32
    %c0_i32_1 = arith.constant 0 : i32
    return %c0_i32, %c0_i32_0 : i32, i32
  }
  func.func @transform_3(%arg0: i32) -> (i32, i32) {
    %c0_i32 = arith.constant 0 : i32
    %c0_i32_0 = arith.constant 0 : i32
    %c0_i32_1 = arith.constant 0 : i32
    return %c0_i32, %c0_i32_0 : i32, i32
  }
  func.func @transform_4(%arg0: i32) -> (i32, i32) {
    %c0_i32 = arith.constant 0 : i32
    %c0_i32_0 = arith.constant 0 : i32
    return %c0_i32, %arg0 : i32, i32
  }
}

</mosaic_0001>

<bundles_post_ra>
// kernel: tpu_custom_call.1
= control target key start
LH: loop header
LB: loop body
LE: loop exit
PB: predicated region body
PF: predicated region fallthrough
CT: control target
= control target key end

     0   :  { %vm42_vm0 = vcmask 1043456   ;;  %vm29_vm1 = vcmask 31744   ;;  %vm565_vm2 = vmmov 1   ;;  %v566_v7 = vmov 0   ;;  %s701_s0 = inlined_call_operand.vmem [shape: f32[12,128], index: 0, kind: input, shape index: {}]   ;;  %s702_s1 = inlined_call_operand.vmem [shape: f32[4,128], index: 1, kind: input, shape index: {}]   ;;  %s703_s2 = inlined_call_operand.vmem [shape: f32[128,32], index: 2, kind: input, shape index: {}]   ;;  %s704_s3 = inlined_call_operand.vmem [shape: f32[72,1], index: 3, kind: input, shape index: {}]   ;;  %s705_s4 = inlined_call_operand.hbm [shape: f32[1,128], index: 4, kind: output, shape index: {}]  }
   0x1   :  { %v20_v0 = vld [vmem:[%s702_s1] sm:$0xf]  ;;  %v26_v2 = vld [vmem:[%s703_s2 + $0x28] sm:$0xff]  ;;  %v27_v5 = vld [vmem:[%s703_s2 + $0x30] sm:$0xff]  ;;  %539 = vset.pattern.permute.xlu0 %v566_v7  ;;  %vm131_vm4 = vcmask 97280   ;;  %540 = vset.pattern.permute.xlu1 %v566_v7 }
   0x2   :  { %v25_v1 = vld [vmem:[%s703_s2 + $0x20] sm:$0xff]  ;;  %486 = vmatprep.subr.msk.mxu0 %vm42_vm0, %v20_v0  ;;  %v19_v4 = vld [vmem:[%s701_s0 + $0x8] sm:$0xf]  ;;  %vm519_vm3 = vmpackc.low %vm42_vm0, %vm565_vm2 }
   0x3   :  { %488 = vmatprep.mubr.msk.f32.mxu0 %vm29_vm1, %v25_v1  ;;  %v18_v3 = vld [vmem:[%s701_s0] sm:$0xff]  ;;  %487 = vmatpush3.msk.msra.mxu0 %vm42_vm0, %v20_v0  ;;  %v28_v8 = vld [vmem:[%s703_s2 + $0x38] sm:$0xff]  ;;  %v234_v10 = vld [vmem:[%s704_s3 + $0x10] sm:$0xff] }
   0x4   :  { %v518_v6 = vpack.c.bf16 %v19_v4, %v18_v3  ;;  %489 = vmatmul.mubr.msk.f32.vlgmr.msra.gmra.mrb[0].mxu0 %vm29_vm1, %v26_v2  ;;  %v232_v9 = vld [vmem:[%s704_s3] sm:$0xff]  ;;  %v233_v12 = vld [vmem:[%s704_s3 + $0x8] sm:$0xff]  ;;  %248 = vperm.xlu1 %540, %v234_v10   ;;  %v235_v14 = vld [vmem:[%s704_s3 + $0x18] sm:$0xff] }
   0x5   :  { %491 = vmatprep.mubr.msk.f32.mxu0 %vm29_vm1, %v27_v5  ;;  %v21_v11 = vld [vmem:[%s703_s2] sm:$0xff]  ;;  %238 = vperm.xlu0 %539, %v232_v9   ;;  %v22_v13 = vld [vmem:[%s703_s2 + $0x8] sm:$0xff] }
   0x6   :  { %520 = vmatprep.subr.msk.bf16.mxu0 %vm519_vm3, %v518_v6 }
   0x7   :  { %523 = vmatpush3.bf16.msk.msra.mxu0 %vm519_vm3, %v518_v6 }
   0x8   :  { %492 = vmatmul.mubr.msk.f32.gmra.mrb[2].mxu0 %vm29_vm1, %v28_v8 }
   0x9   :  { %498 = vmatprep.mubr.msk.f32.mxu0 %vm131_vm4, %v21_v11 }
   0xa   :  { %9 = vsyncpa [#allocation3], 0  ;;  %v23_v15 = vld [vmem:[%s703_s2 + $0x10] sm:$0xff]  ;;  %243 = vperm.xlu0 %539, %v233_v12   ;;  %v268_v16 = vld [vmem:[%s704_s3 + $0x20] sm:$0xff]  ;;  %253 = vperm.xlu1 %540, %v235_v14   ;;  %vm292_vm5 = vcmask 261120  }
   0xb   :  { %v24_v17 = vld [vmem:[%s703_s2 + $0x18] sm:$0xff]  ;;  %v269_v18 = vld [vmem:[%s704_s3 + $0x28] sm:$0xff]  ;;  %v270_v19 = vld [vmem:[%s704_s3 + $0x30] sm:$0xff] }
   0xc   :  { %499 = vmatmul.mubr.msk.f32.vlgmr.msra.gmra.mrb[0].mxu0 %vm131_vm4, %v22_v13  ;;  %v271_v20 = vld [vmem:[%s704_s3 + $0x38] sm:$0xff]  ;;  %v394_v21 = vld [vmem:[%s703_s2 + $0x60] sm:$0xff]  ;;  %v395_v22 = vld [vmem:[%s703_s2 + $0x68] sm:$0xff] }
   0xd   :  { %501 = vmatprep.mubr.msk.f32.mxu0 %vm131_vm4, %v23_v15  ;;  %v396_v23 = vld [vmem:[%s703_s2 + $0x70] sm:$0xff]  ;;  %v397_v24 = vld [vmem:[%s703_s2 + $0x78] sm:$0xff]  ;;  %v431_v25 = vld [vmem:[%s704_s3 + $0x40] sm:$0x1] }
   0xe   :  { %274 = vperm.xlu0 %539, %v268_v16   ;;  %279 = vperm.xlu1 %540, %v269_v18   ;;  %v264_v26 = vld [vmem:[%s703_s2 + $0x40] sm:$0xff]  ;;  %v265_v45 = vld [vmem:[%s703_s2 + $0x48] sm:$0xff]  ;;  %v266_v46 = vld [vmem:[%s703_s2 + $0x50] sm:$0xff] }
   0xf   :  { %512 = vmatprep.mubr.msk.f32.mxu1 %vm292_vm5, %v264_v26  ;;  %v267_v47 = vld [vmem:[%s703_s2 + $0x58] sm:$0xff]  ;;  %s567_s2 = smov [#allocation2]  }
  0x10   :  { %502 = vmatmul.mubr.msk.f32.gmra.mrb[2].mxu0 %vm131_vm4, %v24_v17  ;;  %s445_s14 = sshll.u32 %s567_s2, 4  ;;  %s446_s14 = int_to_ptr.vmem [resolvable:$true] %s445_s14 }
  0x11   :  { %s541_s15 = scalar_lea.vmem %s446_s14, 16  ;;  %s545_s16 = scalar_lea.vmem %s446_s14, 32 }
  0x12   :  { %284 = vperm.xlu0 %539, %v270_v19   ;;  %289 = vperm.xlu1 %540, %v271_v20   ;;  %p542_p0 = scmp.ne.s32.totalorder %s446_s14, %s541_s15  ;;  %p546_p1 = scmp.lt.s32.totalorder %s446_s14, %s446_s14 }
  0x13   :  { %p547_p2 = scmp.lt.s32.totalorder %s545_s16, %s541_s15 }
  0x15   :  { %p548_p3 = por %p547_p2, %p546_p1 }
  0x16   :  { %400 = vperm.xlu0 %539, %v394_v21   ;;  %405 = vperm.xlu1 %540, %v395_v22  }
  0x17   :  { %p549_p4 = pnand %p548_p3, %p542_p0 }
  0x1a   :  { %410 = vperm.xlu0 %539, %v396_v23   ;;  %415 = vperm.xlu1 %540, %v397_v24  }
  0x1e   :  { %434 = vperm.xlu0 %539, %v431_v25  }
  0x83   :  { %v249_v28 = vpop.permute.xlu1 %248 }
  0x84   :  { %v239_v27 = vpop.permute.xlu0 %238 }
  0x89   :  { %v244_v29 = vpop.permute.xlu0 %243  ;;  %v254_v35 = vpop.permute.xlu1 %253 }
  0x8d   :  { %v275_v48 = vpop.permute.xlu0 %274  ;;  %v280_v49 = vpop.permute.xlu1 %279 }
  0x91   :  { %v285_v50 = vpop.permute.xlu0 %284  ;;  %v290_v51 = vpop.permute.xlu1 %289 }
  0x95   :  { %v401_v56 = vpop.permute.xlu0 %400  ;;  %v406_v58 = vpop.permute.xlu1 %405 }
  0x99   :  { %v411_v5 = vpop.permute.xlu0 %410  ;;  %v416_v7 = vpop.permute.xlu1 %415 }
  0x9d   :  { %v435_v17 = vpop.permute.xlu0 %434 }
  0xdf   :  { %v500_v30 = vpop.f32.mrb[0].mxu0 }
  0xe0   :  { %v257_v31 = vadd.f32 %v500_v30, %v244_v29  ;;  %v213_v32 = vpop.f32.mrb[1].mxu0 }
  0xe1   :  { %v256_v33 = vadd.f32 %v239_v27, %v213_v32 }
  0xe2   :  { %v261_v34 = vmax.f32 %v257_v31, 0.0 }
  0xe3   :  { %v260_v36 = vmax.f32 %v256_v33, 0.0  ;;  %v503_v37 = vpop.f32.mrb[2].mxu0 }
  0xe4   :  { %v259_v38 = vadd.f32 %v503_v37, %v254_v35  ;;  %v223_v39 = vpop.f32.mrb[3].mxu0 }
  0xe5   :  { %v258_v40 = vadd.f32 %v249_v28, %v223_v39  ;;  %v524_v41 = vpack.c.bf16 %v261_v34, %v260_v36 }
  0xe6   :  { %v263_v42 = vmax.f32 %v259_v38, 0.0 }
  0xe7   :  { %v262_v43 = vmax.f32 %v258_v40, 0.0  ;;  %525 = vmatprep.subr.bf16.mxu1 %v524_v41 }
  0xe8   :  { %527 = vmatpush3.bf16.msra.mxu1 %v524_v41 }
  0xe9   :  { %v528_v44 = vpack.c.bf16 %v263_v42, %v262_v43 }
  0xeb   :  { %529 = vmatprep.subr.bf16.mxu1 %v528_v44 }
  0xec   :  { %531 = vmatpush3.bf16.msra.mxu1 %v528_v44 }
  0xef   :  { %513 = vmatmul.mubr.msk.f32.vlgmr.msra.gmra.mrb[0].mxu1 %vm292_vm5, %v265_v45 }
  0xf0   :  { %515 = vmatprep.mubr.msk.f32.mxu1 %vm292_vm5, %v266_v46 }
  0xf3   :  { %516 = vmatmul.mubr.msk.f32.gmra.mrb[2].mxu1 %vm292_vm5, %v267_v47 }
 0x1c2   :  { %v514_v52 = vpop.f32.mrb[0].mxu1 }
 0x1c3   :  { %v377_v53 = vadd.f32 %v514_v52, %v280_v49  ;;  %v371_v54 = vpop.f32.mrb[1].mxu1 }
 0x1c4   :  { %v372_v55 = vadd.f32 %v371_v54, %v275_v48 }
 0x1c5   :  { %v391_v57 = vmax.f32 %v377_v53, 0.0 }
 0x1c6   :  { %v390_v59 = vmax.f32 %v372_v55, 0.0  ;;  %v517_v60 = vpop.f32.mrb[2].mxu1 }
 0x1c7   :  { %v419_v61 = vmul.f32 %v406_v58, %v391_v57  ;;  %v387_v62 = vadd.f32 %v517_v60, %v290_v51  ;;  %v381_v63 = vpop.f32.mrb[3].mxu1 }
 0x1c8   :  { %v418_v0 = vmul.f32 %v401_v56, %v390_v59  ;;  %v382_v1 = vadd.f32 %v381_v63, %v285_v50 }
 0x1c9   :  { %v393_v3 = vmax.f32 %v387_v62, 0.0 }
 0x1ca   :  { %v422_v2 = vadd.f32 %v419_v61, %v418_v0  ;;  %v392_v4 = vmax.f32 %v382_v1, 0.0 }
 0x1cb   :  { %v421_v8 = vmul.f32 %v416_v7, %v393_v3 }
 0x1cc   :  { %v420_v6 = vmul.f32 %v411_v5, %v392_v4 }
 0x1ce   :  { %v423_v9 = vadd.f32 %v422_v2, %v420_v6 }
 0x1d0   :  { %v424_v10 = vadd.f32 %v423_v9, %v421_v8 }
 0x1d2   :  { %v425_v11 = vrot.slane %v424_v10, 4 }
 0x1d4   :  { %v426_v12 = vadd.f32 %v425_v11, %v424_v10 }
 0x1d6   :  { %v427_v13 = vrot.slane %v426_v12, 2 }
 0x1d8   :  { %v428_v14 = vadd.f32 %v427_v13, %v426_v12 }
 0x1da   :  { %v429_v15 = vrot.slane %v428_v14, 1 }
 0x1dc   :  { %v430_v16 = vadd.f32 %v429_v15, %v428_v14 }
 0x1de   :  { %v437_v18 = vadd.f32 %v435_v17, %v430_v16 }
 0x1e0   :  { %438 = vst [vmem:[#allocation2] sm:$0x1] %v437_v18 }
 0x1e1   :  { %552 = shalt.err (!%p549_p4)
}
 0x1e2   :  { %s553_s19 = scalar_lea.hbm %s705_s4, 16 }
 0x1e3   :  { %p554_p5 = scmp.ne.s32.totalorder %s705_s4, %s553_s19  ;;  %p557_p6 = scmp.lt.u32.totalorder %s553_s19, %s705_s4 }
 0x1e5   :  { %p559_p7 = pnand %p557_p6, %p554_p5 }
 0x1e7   :  { %562 = shalt.err (!%p559_p7)
}
 0x1e8   :  { %448 = dma.vmem_to_hbm [thread:$0]  %s446_s14, 16, %s705_s4, [#allocation3]  }
 0x1e9   :  { %563 = dma.done.wait [#allocation3], 16  }
 0x1ea   :  { %564 = vsyncadd [#allocation3], 4294967280 }
 0x1eb   :  { %452 = vsyncpa [#allocation3], 1 }

</bundles_post_ra>
